<compile_context>
chip_gen: v6e
topology: v6e:2x2x1
jax: 0.10.0
libtpu: 0.0.40
codegen_flags: <defaults>
</compile_context>

<pallas_src>
import math

import jax
import jax.numpy as jnp
from jax import lax
from jax.experimental import pallas as pl
from jax.experimental.pallas import tpu as pltpu


C_PAD = 64  # every channel dim padded to 64 lanes -> one uniform weight slab


def _store_tconv(even, odd, bias, act, out_ref):
    """Interleave even/odd rows of a k=3,s=2,p=1 transposed conv into out_ref.

      out[2m]   = even[m],  out[2m+1] = odd[m]
    Bias + activation are applied to the register values *before* the strided
    sublane stores, so the next layer's reload feeds its matmul directly.
    """
    lin = even.shape[0]
    out_ref[pl.ds(0, lin, 2), :] = act(even + bias)        # rows 0,2,...,2*lin-2
    out_ref[pl.ds(1, lin - 1, 2), :] = act(odd + bias)      # rows 1,3,...,2*lin-3


def _tconv_lc(v, w0, w1, w2, bias, act, out_ref):
    """ConvTranspose1d(k=3, s=2, p=1) on an (L, C) activation already in VMEM.

      even[m] = v[m] @ W[1]
      odd[m]  = v[m] @ W[2] + v[m+1] @ W[0]
    """
    lin = v.shape[0]
    even = jnp.dot(v, w1, preferred_element_type=jnp.float32)
    odd = (jnp.dot(v[: lin - 1, :], w2, preferred_element_type=jnp.float32)
           + jnp.dot(v[1:, :], w0, preferred_element_type=jnp.float32))
    _store_tconv(even, odd, bias, act, out_ref)


def model_kernel(x_ref, w_ref, b_ref, o_ref, y1_ref, y2_ref, y3_ref):
    # ---- layer 1: ConvTranspose1d(3->32, padded to 64) + leaky_relu(0.2) ----
    # x arrives channel-major (1, Cin, L0); contracting lhs dim 0 (trans-LHS is
    # MXU-native) removes the wrapper-side transpose entirely.  Odd rows are
    # built by slicing the (L0, C) matmul results on sublanes (cheap).
    x_cl = x_ref[0]                                        # (3, L0)
    lin0 = x_cl.shape[1]
    dn = (((0,), (0,)), ((), ()))
    w1_0 = w_ref[0, 0][:3, :]
    w1_1 = w_ref[0, 1][:3, :]
    w1_2 = w_ref[0, 2][:3, :]
    even = lax.dot_general(x_cl, w1_1, dn, preferred_element_type=jnp.float32)
    a = lax.dot_general(x_cl, w1_2, dn, preferred_element_type=jnp.float32)
    b = lax.dot_general(x_cl, w1_0, dn, preferred_element_type=jnp.float32)
    odd = a[: lin0 - 1, :] + b[1:, :]
    leaky = lambda t: jnp.where(t >= 0.0, t, 0.2 * t)
    _store_tconv(even, odd, b_ref[0], leaky, y1_ref)       # (L1, 64) activated

    # ---- layer 2: centre-tap ConvTranspose2d(32->64) + tanh ----
    _tconv_lc(y1_ref[...], w_ref[1, 0], w_ref[1, 1], w_ref[1, 2],
              b_ref[1], jnp.tanh, y2_ref)                  # (L2, 64) activated

    # ---- layer 3: centre-tap ConvTranspose3d(64->9, padded to 64) ----
    _tconv_lc(y2_ref[...], w_ref[2, 0], w_ref[2, 1], w_ref[2, 2],
              b_ref[2], lambda t: t, y3_ref)               # (L3, 64), bias added

    # ---- transpose to lane-dense (9, L3) + softmax over the spatial axis ----
    # In-kernel (9, 64) selection matrix (two iotas + compare) replaces the old
    # eye9 input DMA; one trans-RHS MXU pass transposes and drops padded chans.
    rows = lax.broadcasted_iota(jnp.int32, (9, C_PAD), 0)
    cols = lax.broadcasted_iota(jnp.int32, (9, C_PAD), 1)
    sel = (rows == cols).astype(jnp.float32)
    v5 = lax.dot_general(sel, y3_ref[...], (((1,), (1,)), ((), ())),
                         preferred_element_type=jnp.float32)   # (9, L3)
    m = jnp.max(v5, axis=-1, keepdims=True)
    e = jnp.exp(v5 - m)
    s = jnp.sum(e, axis=-1, keepdims=True)
    o_ref[...] = e * pl.reciprocal(s, approx=False)


def init_params(key):
    """Deterministic params with PyTorch-native weight layouts."""
    def u(k, shape, fan):
        bound = 1.0 / math.sqrt(fan)
        return jax.random.uniform(k, shape, jnp.float32, -bound, bound)

    ks = jax.random.split(key, 6)
    w1 = u(ks[0], (3, 32, 3), 3 * 3)            # ConvTranspose1d: (Cin, Cout, K)
    b1 = u(ks[1], (32,), 3 * 3)
    w2 = u(ks[2], (32, 64, 3, 3), 32 * 9)       # ConvTranspose2d: (Cin, Cout, Kh, Kw)
    b2 = u(ks[3], (64,), 32 * 9)
    w3 = u(ks[4], (64, 9, 3, 3, 3), 64 * 27)    # ConvTranspose3d: (Cin, Cout, Kd, Kh, Kw)
    b3 = u(ks[5], (9,), 64 * 27)
    return w1, b1, w2, b2, w3, b3


def prepare_params(params):
    """One-time layout prep: pack everything into two padded slabs."""
    w1, b1, w2, b2, w3, b3 = params
    w1k = jnp.transpose(w1, (2, 0, 1))                 # (K, Cin, Cout) = (3, 3, 32)
    w2k = jnp.transpose(w2[:, :, 1, :], (2, 0, 1))     # centre kh tap  -> (3, 32, 64)
    w3k = jnp.transpose(w3[:, :, 1, 1, :], (2, 0, 1))  # centre kd,kh   -> (3, 64, 9)

    def pad_w(w):                                      # (3, cin, cout) -> (3, 64, 64)
        _, cin, cout = w.shape
        return jnp.pad(w, ((0, 0), (0, C_PAD - cin), (0, C_PAD - cout)))

    def pad_b(b):                                      # (c,) -> (1, 64)
        return jnp.pad(b, (0, C_PAD - b.shape[0])).reshape(1, C_PAD)

    w_slab = jnp.stack([pad_w(w1k), pad_w(w2k), pad_w(w3k)], axis=0)  # (3, 3, 64, 64)
    b_slab = jnp.stack([pad_b(b1), pad_b(b2), pad_b(b3)], axis=0)     # (3, 1, 64)
    return w_slab, b_slab


@jax.jit
def model_forward(x_ncl, w_slab, b_slab):
    n, cin, l0 = x_ncl.shape
    assert n == 1 and cin == 3
    l1 = 2 * l0 - 1
    l2 = 2 * l1 - 1
    l3 = 2 * l2 - 1

    flops = 2 * (3 * l0 * 3 * C_PAD
                 + 3 * l1 * C_PAD * C_PAD
                 + 3 * l2 * C_PAD * C_PAD
                 + 9 * C_PAD * l3)
    transcendentals = l2 * C_PAD + 9 * l3
    bytes_accessed = 4 * (cin * l0 + 3 * 3 * C_PAD * C_PAD + 3 * C_PAD + 9 * l3)

    out_cl = pl.pallas_call(
        model_kernel,
        out_shape=jax.ShapeDtypeStruct((9, l3), jnp.float32),
        in_specs=[pl.BlockSpec(memory_space=pltpu.MemorySpace.VMEM)
                  for _ in range(3)],
        out_specs=pl.BlockSpec(memory_space=pltpu.MemorySpace.VMEM),
        scratch_shapes=[
            pltpu.VMEM((l1, C_PAD), jnp.float32),
            pltpu.VMEM((l2, C_PAD), jnp.float32),
            pltpu.VMEM((l3, C_PAD), jnp.float32),
        ],
        cost_estimate=pl.CostEstimate(flops=flops,
                                      transcendentals=transcendentals,
                                      bytes_accessed=bytes_accessed),
    )(x_ncl, w_slab, b_slab)

    # torch NCDHW convention: (1, 9, 1, 1, L3).  (9, L3) is already
    # channel-major, so this is a metadata-only reshape.
    return out_cl.reshape(1, 9, 1, 1, l3)


if __name__ == "__main__":
    key = jax.random.PRNGKey(0)
    kx, kp = jax.random.split(key)
    x1 = jax.random.normal(kx, (1, 3, 16), jnp.float32)   # small L (module example used 32)
    params = init_params(kp)
    w_slab, b_slab = prepare_params(params)                # one-time weight/bias slab prep

    out = model_forward(x1, w_slab, b_slab)
    out = jax.block_until_ready(out)

    assert out.shape == (1, 9, 1, 1, 121), out.shape
    assert bool(jnp.all(jnp.isfinite(out)))
    # softmax rows must sum to 1 over the last (spatial) axis
    sums = jnp.sum(out, axis=-1)
    assert bool(jnp.all(jnp.abs(sums - 1.0) < 1e-4))
    print("KERNEL_OK")
</pallas_src>

<mosaic_0001>
module attributes {stable_mosaic.version = 11 : i64} {
  func.func @model_kernel(%arg0: memref<1x3x16xf32, #tpu.memory_space<vmem>>, %arg1: memref<3x3x64x64xf32, #tpu.memory_space<vmem>>, %arg2: memref<3x1x64xf32, #tpu.memory_space<vmem>>, %arg3: memref<9x121xf32, #tpu.memory_space<vmem>>, %arg4: memref<31x64xf32, #tpu.memory_space<vmem>>, %arg5: memref<61x64xf32, #tpu.memory_space<vmem>>, %arg6: memref<121x64xf32, #tpu.memory_space<vmem>>) attributes {dimension_semantics = [], scalar_prefetch = 0 : i64, scratch_operands = 3 : i64, tpu.core_type = #tpu.core_type<tc>} {
    %c0 = arith.constant 0 : index
    %c0_0 = arith.constant 0 : index
    %c0_1 = arith.constant 0 : index
    %0 = vector.load %arg0[%c0, %c0_0, %c0_1] : memref<1x3x16xf32, #tpu.memory_space<vmem>>, vector<1x3x16xf32>
    %1 = vector.shape_cast %0 : vector<1x3x16xf32> to vector<3x16xf32>
    %c0_2 = arith.constant 0 : index
    %c0_3 = arith.constant 0 : index
    %c0_4 = arith.constant 0 : index
    %c0_5 = arith.constant 0 : index
    %2 = vector.load %arg1[%c0_2, %c0_3, %c0_4, %c0_5] : memref<3x3x64x64xf32, #tpu.memory_space<vmem>>, vector<1x1x64x64xf32>
    %3 = vector.shape_cast %2 : vector<1x1x64x64xf32> to vector<64x64xf32>
    %4 = vector.extract_strided_slice %3 {offsets = [0, 0], sizes = [3, 64], strides = [1, 1]} : vector<64x64xf32> to vector<3x64xf32>
    %c0_6 = arith.constant 0 : index
    %c1 = arith.constant 1 : index
    %c0_7 = arith.constant 0 : index
    %c0_8 = arith.constant 0 : index
    %5 = vector.load %arg1[%c0_6, %c1, %c0_7, %c0_8] : memref<3x3x64x64xf32, #tpu.memory_space<vmem>>, vector<1x1x64x64xf32>
    %6 = vector.shape_cast %5 : vector<1x1x64x64xf32> to vector<64x64xf32>
    %7 = vector.extract_strided_slice %6 {offsets = [0, 0], sizes = [3, 64], strides = [1, 1]} : vector<64x64xf32> to vector<3x64xf32>
    %c0_9 = arith.constant 0 : index
    %c2 = arith.constant 2 : index
    %c0_10 = arith.constant 0 : index
    %c0_11 = arith.constant 0 : index
    %8 = vector.load %arg1[%c0_9, %c2, %c0_10, %c0_11] : memref<3x3x64x64xf32, #tpu.memory_space<vmem>>, vector<1x1x64x64xf32>
    %9 = vector.shape_cast %8 : vector<1x1x64x64xf32> to vector<64x64xf32>
    %10 = vector.extract_strided_slice %9 {offsets = [0, 0], sizes = [3, 64], strides = [1, 1]} : vector<64x64xf32> to vector<3x64xf32>
    %cst = arith.constant dense<0.000000e+00> : vector<16x64xf32>
    %11 = tpu.matmul %1, %7, %cst {dimension_numbers = #tpu.dot_dimension_numbers<[0], [0], [1], [1], [0, 1, 1, 1], [], []>} : vector<3x16xf32>, vector<3x64xf32>, vector<16x64xf32> -> vector<16x64xf32>
    %cst_12 = arith.constant dense<0.000000e+00> : vector<16x64xf32>
    %12 = tpu.matmul %1, %10, %cst_12 {dimension_numbers = #tpu.dot_dimension_numbers<[0], [0], [1], [1], [0, 1, 1, 1], [], []>} : vector<3x16xf32>, vector<3x64xf32>, vector<16x64xf32> -> vector<16x64xf32>
    %cst_13 = arith.constant dense<0.000000e+00> : vector<16x64xf32>
    %13 = tpu.matmul %1, %4, %cst_13 {dimension_numbers = #tpu.dot_dimension_numbers<[0], [0], [1], [1], [0, 1, 1, 1], [], []>} : vector<3x16xf32>, vector<3x64xf32>, vector<16x64xf32> -> vector<16x64xf32>
    %14 = vector.extract_strided_slice %12 {offsets = [0, 0], sizes = [15, 64], strides = [1, 1]} : vector<16x64xf32> to vector<15x64xf32>
    %15 = vector.extract_strided_slice %13 {offsets = [1, 0], sizes = [15, 64], strides = [1, 1]} : vector<16x64xf32> to vector<15x64xf32>
    %16 = arith.addf %14, %15 : vector<15x64xf32>
    %c0_14 = arith.constant 0 : index
    %c0_15 = arith.constant 0 : index
    %c0_16 = arith.constant 0 : index
    %17 = vector.load %arg2[%c0_14, %c0_15, %c0_16] : memref<3x1x64xf32, #tpu.memory_space<vmem>>, vector<1x1x64xf32>
    %18 = vector.shape_cast %17 : vector<1x1x64xf32> to vector<1x64xf32>
    %19 = vector.broadcast %18 : vector<1x64xf32> to vector<16x64xf32>
    %20 = arith.addf %11, %19 : vector<16x64xf32>
    %cst_17 = arith.constant 0.000000e+00 : f32
    %21 = vector.broadcast %cst_17 : f32 to vector<16x64xf32>
    %22 = arith.cmpf oge, %20, %21 : vector<16x64xf32>
    %cst_18 = arith.constant 2.000000e-01 : f32
    %23 = vector.broadcast %cst_18 : f32 to vector<16x64xf32>
    %24 = arith.mulf %23, %20 : vector<16x64xf32>
    %25 = arith.select %22, %20, %24 : vector<16x64xi1>, vector<16x64xf32>
    %c0_19 = arith.constant 0 : index
    %c0_20 = arith.constant 0 : index
    %26 = tpu.strided_load %arg4[%c0_19, %c0_20] {strides = array<i32: 2, 1>} : memref<31x64xf32, #tpu.memory_space<vmem>>, vector<16x64xf32>
    tpu.strided_store %arg4[%c0_19, %c0_20], %25 {strides = array<i32: 2, 1>} : memref<31x64xf32, #tpu.memory_space<vmem>>, vector<16x64xf32>
    %27 = vector.broadcast %18 : vector<1x64xf32> to vector<15x64xf32>
    %28 = arith.addf %16, %27 : vector<15x64xf32>
    %cst_21 = arith.constant 0.000000e+00 : f32
    %29 = vector.broadcast %cst_21 : f32 to vector<15x64xf32>
    %30 = arith.cmpf oge, %28, %29 : vector<15x64xf32>
    %cst_22 = arith.constant 2.000000e-01 : f32
    %31 = vector.broadcast %cst_22 : f32 to vector<15x64xf32>
    %32 = arith.mulf %31, %28 : vector<15x64xf32>
    %33 = arith.select %30, %28, %32 : vector<15x64xi1>, vector<15x64xf32>
    %c1_23 = arith.constant 1 : index
    %c0_24 = arith.constant 0 : index
    %34 = tpu.strided_load %arg4[%c1_23, %c0_24] {strides = array<i32: 2, 1>} : memref<31x64xf32, #tpu.memory_space<vmem>>, vector<15x64xf32>
    tpu.strided_store %arg4[%c1_23, %c0_24], %33 {strides = array<i32: 2, 1>} : memref<31x64xf32, #tpu.memory_space<vmem>>, vector<15x64xf32>
    %c0_25 = arith.constant 0 : index
    %c0_26 = arith.constant 0 : index
    %35 = vector.load %arg4[%c0_25, %c0_26] : memref<31x64xf32, #tpu.memory_space<vmem>>, vector<31x64xf32>
    %c1_27 = arith.constant 1 : index
    %c0_28 = arith.constant 0 : index
    %c0_29 = arith.constant 0 : index
    %c0_30 = arith.constant 0 : index
    %36 = vector.load %arg1[%c1_27, %c0_28, %c0_29, %c0_30] : memref<3x3x64x64xf32, #tpu.memory_space<vmem>>, vector<1x1x64x64xf32>
    %37 = vector.shape_cast %36 : vector<1x1x64x64xf32> to vector<64x64xf32>
    %c1_31 = arith.constant 1 : index
    %c1_32 = arith.constant 1 : index
    %c0_33 = arith.constant 0 : index
    %c0_34 = arith.constant 0 : index
    %38 = vector.load %arg1[%c1_31, %c1_32, %c0_33, %c0_34] : memref<3x3x64x64xf32, #tpu.memory_space<vmem>>, vector<1x1x64x64xf32>
    %39 = vector.shape_cast %38 : vector<1x1x64x64xf32> to vector<64x64xf32>
    %c1_35 = arith.constant 1 : index
    %c2_36 = arith.constant 2 : index
    %c0_37 = arith.constant 0 : index
    %c0_38 = arith.constant 0 : index
    %40 = vector.load %arg1[%c1_35, %c2_36, %c0_37, %c0_38] : memref<3x3x64x64xf32, #tpu.memory_space<vmem>>, vector<1x1x64x64xf32>
    %41 = vector.shape_cast %40 : vector<1x1x64x64xf32> to vector<64x64xf32>
    %c1_39 = arith.constant 1 : index
    %c0_40 = arith.constant 0 : index
    %c0_41 = arith.constant 0 : index
    %42 = vector.load %arg2[%c1_39, %c0_40, %c0_41] : memref<3x1x64xf32, #tpu.memory_space<vmem>>, vector<1x1x64xf32>
    %43 = vector.shape_cast %42 : vector<1x1x64xf32> to vector<1x64xf32>
    %cst_42 = arith.constant dense<0.000000e+00> : vector<31x64xf32>
    %44 = tpu.matmul %35, %39, %cst_42 {dimension_numbers = #tpu.dot_dimension_numbers<[1], [0], [0], [1], [0, 0, 1, 1], [], []>} : vector<31x64xf32>, vector<64x64xf32>, vector<31x64xf32> -> vector<31x64xf32>
    %45 = vector.extract_strided_slice %35 {offsets = [0, 0], sizes = [30, 64], strides = [1, 1]} : vector<31x64xf32> to vector<30x64xf32>
    %cst_43 = arith.constant dense<0.000000e+00> : vector<30x64xf32>
    %46 = tpu.matmul %45, %41, %cst_43 {dimension_numbers = #tpu.dot_dimension_numbers<[1], [0], [0], [1], [0, 0, 1, 1], [], []>} : vector<30x64xf32>, vector<64x64xf32>, vector<30x64xf32> -> vector<30x64xf32>
    %47 = vector.extract_strided_slice %35 {offsets = [1, 0], sizes = [30, 64], strides = [1, 1]} : vector<31x64xf32> to vector<30x64xf32>
    %cst_44 = arith.constant dense<0.000000e+00> : vector<30x64xf32>
    %48 = tpu.matmul %47, %37, %cst_44 {dimension_numbers = #tpu.dot_dimension_numbers<[1], [0], [0], [1], [0, 0, 1, 1], [], []>} : vector<30x64xf32>, vector<64x64xf32>, vector<30x64xf32> -> vector<30x64xf32>
    %49 = arith.addf %46, %48 : vector<30x64xf32>
    %50 = vector.broadcast %43 : vector<1x64xf32> to vector<31x64xf32>
    %51 = arith.addf %44, %50 : vector<31x64xf32>
    %52 = math.tanh %51 : vector<31x64xf32>
    %c0_45 = arith.constant 0 : index
    %c0_46 = arith.constant 0 : index
    %53 = tpu.strided_load %arg5[%c0_45, %c0_46] {strides = array<i32: 2, 1>} : memref<61x64xf32, #tpu.memory_space<vmem>>, vector<31x64xf32>
    tpu.strided_store %arg5[%c0_45, %c0_46], %52 {strides = array<i32: 2, 1>} : memref<61x64xf32, #tpu.memory_space<vmem>>, vector<31x64xf32>
    %54 = vector.broadcast %43 : vector<1x64xf32> to vector<30x64xf32>
    %55 = arith.addf %49, %54 : vector<30x64xf32>
    %56 = math.tanh %55 : vector<30x64xf32>
    %c1_47 = arith.constant 1 : index
    %c0_48 = arith.constant 0 : index
    %57 = tpu.strided_load %arg5[%c1_47, %c0_48] {strides = array<i32: 2, 1>} : memref<61x64xf32, #tpu.memory_space<vmem>>, vector<30x64xf32>
    tpu.strided_store %arg5[%c1_47, %c0_48], %56 {strides = array<i32: 2, 1>} : memref<61x64xf32, #tpu.memory_space<vmem>>, vector<30x64xf32>
    %c0_49 = arith.constant 0 : index
    %c0_50 = arith.constant 0 : index
    %58 = vector.load %arg5[%c0_49, %c0_50] : memref<61x64xf32, #tpu.memory_space<vmem>>, vector<61x64xf32>
    %c2_51 = arith.constant 2 : index
    %c0_52 = arith.constant 0 : index
    %c0_53 = arith.constant 0 : index
    %c0_54 = arith.constant 0 : index
    %59 = vector.load %arg1[%c2_51, %c0_52, %c0_53, %c0_54] : memref<3x3x64x64xf32, #tpu.memory_space<vmem>>, vector<1x1x64x64xf32>
    %60 = vector.shape_cast %59 : vector<1x1x64x64xf32> to vector<64x64xf32>
    %c2_55 = arith.constant 2 : index
    %c1_56 = arith.constant 1 : index
    %c0_57 = arith.constant 0 : index
    %c0_58 = arith.constant 0 : index
    %61 = vector.load %arg1[%c2_55, %c1_56, %c0_57, %c0_58] : memref<3x3x64x64xf32, #tpu.memory_space<vmem>>, vector<1x1x64x64xf32>
    %62 = vector.shape_cast %61 : vector<1x1x64x64xf32> to vector<64x64xf32>
    %c2_59 = arith.constant 2 : index
    %c2_60 = arith.constant 2 : index
    %c0_61 = arith.constant 0 : index
    %c0_62 = arith.constant 0 : index
    %63 = vector.load %arg1[%c2_59, %c2_60, %c0_61, %c0_62] : memref<3x3x64x64xf32, #tpu.memory_space<vmem>>, vector<1x1x64x64xf32>
    %64 = vector.shape_cast %63 : vector<1x1x64x64xf32> to vector<64x64xf32>
    %c2_63 = arith.constant 2 : index
    %c0_64 = arith.constant 0 : index
    %c0_65 = arith.constant 0 : index
    %65 = vector.load %arg2[%c2_63, %c0_64, %c0_65] : memref<3x1x64xf32, #tpu.memory_space<vmem>>, vector<1x1x64xf32>
    %66 = vector.shape_cast %65 : vector<1x1x64xf32> to vector<1x64xf32>
    %cst_66 = arith.constant dense<0.000000e+00> : vector<61x64xf32>
    %67 = tpu.matmul %58, %62, %cst_66 {dimension_numbers = #tpu.dot_dimension_numbers<[1], [0], [0], [1], [0, 0, 1, 1], [], []>} : vector<61x64xf32>, vector<64x64xf32>, vector<61x64xf32> -> vector<61x64xf32>
    %68 = vector.extract_strided_slice %58 {offsets = [0, 0], sizes = [60, 64], strides = [1, 1]} : vector<61x64xf32> to vector<60x64xf32>
    %cst_67 = arith.constant dense<0.000000e+00> : vector<60x64xf32>
    %69 = tpu.matmul %68, %64, %cst_67 {dimension_numbers = #tpu.dot_dimension_numbers<[1], [0], [0], [1], [0, 0, 1, 1], [], []>} : vector<60x64xf32>, vector<64x64xf32>, vector<60x64xf32> -> vector<60x64xf32>
    %70 = vector.extract_strided_slice %58 {offsets = [1, 0], sizes = [60, 64], strides = [1, 1]} : vector<61x64xf32> to vector<60x64xf32>
    %cst_68 = arith.constant dense<0.000000e+00> : vector<60x64xf32>
    %71 = tpu.matmul %70, %60, %cst_68 {dimension_numbers = #tpu.dot_dimension_numbers<[1], [0], [0], [1], [0, 0, 1, 1], [], []>} : vector<60x64xf32>, vector<64x64xf32>, vector<60x64xf32> -> vector<60x64xf32>
    %72 = arith.addf %69, %71 : vector<60x64xf32>
    %73 = vector.broadcast %66 : vector<1x64xf32> to vector<61x64xf32>
    %74 = arith.addf %67, %73 : vector<61x64xf32>
    %c0_69 = arith.constant 0 : index
    %c0_70 = arith.constant 0 : index
    %75 = tpu.strided_load %arg6[%c0_69, %c0_70] {strides = array<i32: 2, 1>} : memref<121x64xf32, #tpu.memory_space<vmem>>, vector<61x64xf32>
    tpu.strided_store %arg6[%c0_69, %c0_70], %74 {strides = array<i32: 2, 1>} : memref<121x64xf32, #tpu.memory_space<vmem>>, vector<61x64xf32>
    %76 = vector.broadcast %66 : vector<1x64xf32> to vector<60x64xf32>
    %77 = arith.addf %72, %76 : vector<60x64xf32>
    %c1_71 = arith.constant 1 : index
    %c0_72 = arith.constant 0 : index
    %78 = tpu.strided_load %arg6[%c1_71, %c0_72] {strides = array<i32: 2, 1>} : memref<121x64xf32, #tpu.memory_space<vmem>>, vector<60x64xf32>
    tpu.strided_store %arg6[%c1_71, %c0_72], %77 {strides = array<i32: 2, 1>} : memref<121x64xf32, #tpu.memory_space<vmem>>, vector<60x64xf32>
    %79 = tpu.iota {dimensions = array<i32: 0>} : vector<9x64xi32>
    %80 = tpu.iota {dimensions = array<i32: 1>} : vector<9x64xi32>
    %81 = arith.cmpi eq, %79, %80 : vector<9x64xi32>
    %82 = arith.extui %81 : vector<9x64xi1> to vector<9x64xi32>
    %83 = arith.sitofp %82 : vector<9x64xi32> to vector<9x64xf32>
    %c0_73 = arith.constant 0 : index
    %c0_74 = arith.constant 0 : index
    %84 = vector.load %arg6[%c0_73, %c0_74] : memref<121x64xf32, #tpu.memory_space<vmem>>, vector<121x64xf32>
    %cst_75 = arith.constant dense<0.000000e+00> : vector<9x121xf32>
    %85 = tpu.matmul %83, %84, %cst_75 {dimension_numbers = #tpu.dot_dimension_numbers<[1], [1], [0], [0], [0, 0, 1, 0], [], []>} : vector<9x64xf32>, vector<121x64xf32>, vector<9x121xf32> -> vector<9x121xf32>
    %cst_76 = arith.constant dense<0xFF800000> : vector<9xf32>
    %86 = vector.multi_reduction <maximumf>, %85, %cst_76 [1] : vector<9x121xf32> to vector<9xf32>
    %87 = vector.shape_cast %86 : vector<9xf32> to vector<9x1xf32>
    %88 = vector.broadcast %87 : vector<9x1xf32> to vector<9x121xf32>
    %89 = arith.subf %85, %88 : vector<9x121xf32>
    %90 = math.exp %89 : vector<9x121xf32>
    %cst_77 = arith.constant dense<0.000000e+00> : vector<9xf32>
    %91 = vector.multi_reduction <add>, %90, %cst_77 [1] : vector<9x121xf32> to vector<9xf32>
    %92 = vector.shape_cast %91 : vector<9xf32> to vector<9x1xf32>
    %93 = tpu.reciprocal %92 : vector<9x1xf32> -> vector<9x1xf32>
    %94 = vector.broadcast %93 : vector<9x1xf32> to vector<9x121xf32>
    %95 = arith.mulf %90, %94 : vector<9x121xf32>
    %c0_78 = arith.constant 0 : index
    %c0_79 = arith.constant 0 : index
    %96 = vector.load %arg3[%c0_78, %c0_79] : memref<9x121xf32, #tpu.memory_space<vmem>>, vector<9x121xf32>
    tpu.vector_store %arg3[%c0_78, %c0_79], %95 {strides = array<i32>} : memref<9x121xf32, #tpu.memory_space<vmem>>, vector<9x121xf32>,
    return
  }
}

</mosaic_0001>

<bundles_post_ra>
// kernel: model_forward.1
= control target key start
LH: loop header
LB: loop body
LE: loop exit
PB: predicated region body
PF: predicated region fallthrough
CT: control target
= control target key end

     0   :  { %8 = vsyncpa [#allocation6], 0  ;;  %s1765_s12 = smov [#allocation5]   ;;  %s1920_s0 = inlined_call_operand.vmem [shape: f32[1,3,16], index: 0, kind: input, shape index: {}]   ;;  %s1921_s1 = inlined_call_operand.hbm [shape: f32[3,3,64,64], index: 1, kind: input, shape index: {}]   ;;  %s1922_s2 = inlined_call_operand.vmem [shape: f32[3,1,64], index: 2, kind: input, shape index: {}]   ;;  %s1923_s3 = inlined_call_operand.vmem [shape: f32[9,121], index: 3, kind: output, shape index: {}]  }
   0x1   :  { %s16_s13 = sshll.u32 %s1765_s12, 4  ;;  %s17_s13 = int_to_ptr.vmem [resolvable:$true] %s16_s13 }
   0x2   :  { %s1751_s14 = scalar_lea.vmem %s17_s13, 9216  ;;  %p1756_p1 = scmp.lt.s32.totalorder %s17_s13, %s17_s13 }
   0x3   :  { %p1752_p0 = scmp.ne.s32.totalorder %s17_s13, %s1751_s14  ;;  %p1757_p2 = scmp.lt.s32.totalorder %s1751_s14, %s1751_s14 }
   0x5   :  { %p1758_p3 = por %p1757_p2, %p1756_p1 }
   0x7   :  { %p1759_p4 = pnand %p1758_p3, %p1752_p0 }
   0x9   :  { %1762 = shalt.err (!%p1759_p4)
}
   0xa   :  { %s1766_s15 = smov 128   ;;  %s1767_s16 = smov 8  }
   0xb   :  { %22 = dma.hbm_to_vmem [thread:$0]  %s1921_s1, 9216, %s17_s13, [#allocation6], %s1766_s15, %s1766_s15, %s1767_s16  }
   0xc   :  { %1763 = dma.done.wait [#allocation6], 9216  }
   0xd   :  { %1764 = vsyncadd [#allocation6], 4294958080  ;;  %vm73_vm0 = vcmask 1042432   ;;  %v28_v0 = vld [vmem:[%s1920_s0] sm:$0x7]  ;;  %vm66_vm1 = vcmask 23552  }
   0xe   :  { %v33_v1 = vld [vmem:[#allocation5 + $0x80] sm:$0xff]  ;;  %34 = vxpose.xlu0.b32.start.end [1/1] (short) (narrow) %v28_v0, 16  ;;  %v367_v6 = vld [vmem:[#allocation5 + $0x138] sm:$0xff]  ;;  %v366_v8 = vld [vmem:[#allocation5 + $0x130] sm:$0xff]  ;;  %vm232_vm2 = vcmask 1046528   ;;  %vm390_vm7 = vcmask 523264  }
   0xf   :  { %v29_v2 = vld [vmem:[#allocation5] sm:$0xff]  ;;  %1515 = vmatprep.subr.msk.mxu0 %vm73_vm0, %v33_v1  ;;  %1574 = vmatprep.subr.mxu1 %v367_v6  ;;  %v358_v7 = vld [vmem:[#allocation5 + $0xf8] sm:$0xff]  ;;  %v357_v9 = vld [vmem:[#allocation5 + $0xf0] sm:$0xff]  ;;  %vm1307_vm10 = vcmask 983040   ;;  %vm1303_vm11 = vcmask 990208  }
  0x10   :  { %1516 = vmatpush3.msk.msra.mxu0 %vm73_vm0, %v33_v1  ;;  %v31_v5 = vld [vmem:[#allocation5 + $0x40] sm:$0xff]  ;;  %1575 = vmatpush3.msra.mxu1 %v367_v6  ;;  %v365_v10 = vld [vmem:[#allocation5 + $0x128] sm:$0xff]  ;;  %v363_v14 = vld [vmem:[#allocation5 + $0x118] sm:$0xff] }
  0x11   :  { %1520 = vmatprep.subr.msk.mxu0 %vm73_vm0, %v29_v2  ;;  %1576 = vmatprep.subr.mxu1 %v366_v8  ;;  %v356_v11 = vld [vmem:[#allocation5 + $0xe8] sm:$0xff]  ;;  %v364_v12 = vld [vmem:[#allocation5 + $0x120] sm:$0xff]  ;;  %v354_v15 = vld [vmem:[#allocation5 + $0xd8] sm:$0xff] }
  0x12   :  { %1577 = vmatpush3.msra.mxu1 %v366_v8  ;;  %v355_v13 = vld [vmem:[#allocation5 + $0xe0] sm:$0xff]  ;;  %v362_v16 = vld [vmem:[#allocation5 + $0x110] sm:$0xff]  ;;  %v361_v18 = vld [vmem:[#allocation5 + $0x108] sm:$0xff] }
  0x13   :  { %1578 = vmatprep.subr.mxu1 %v365_v10  ;;  %v353_v17 = vld [vmem:[#allocation5 + $0xd0] sm:$0xff]  ;;  %v352_v19 = vld [vmem:[#allocation5 + $0xc8] sm:$0xff]  ;;  %v360_v20 = vld [vmem:[#allocation5 + $0x100] sm:$0xff] }
  0x14   :  { %1579 = vmatpush3.msra.mxu1 %v365_v10  ;;  %v351_v21 = vld [vmem:[#allocation5 + $0xc0] sm:$0xff]  ;;  %v376_v22 = vld [vmem:[#allocation5 + $0x178] sm:$0xff]  ;;  %v375_v57 = vld [vmem:[#allocation5 + $0x170] sm:$0xff] }
  0x15   :  { %1580 = vmatprep.subr.mxu1 %v364_v12  ;;  %v1340_v27 = vld [vmem:[%s1922_s2] ss:$0 sm:$0xff]  ;;  %v374_v59 = vld [vmem:[#allocation5 + $0x168] sm:$0xff]  ;;  %v372_v61 = vld [vmem:[#allocation5 + $0x158] sm:$0xff] }
  0x16   :  { %1581 = vmatpush3.msra.mxu1 %v364_v12  ;;  %v373_v60 = vld [vmem:[#allocation5 + $0x160] sm:$0xff]  ;;  %v371_v62 = vld [vmem:[#allocation5 + $0x150] sm:$0xff]  ;;  %v370_v63 = vld [vmem:[#allocation5 + $0x148] sm:$0xff] }
  0x17   :  { %1582 = vmatprep.subr.mxu1 %v363_v14  ;;  %v369_v0 = vld [vmem:[#allocation5 + $0x140] sm:$0xff]  ;;  %v729_v1 = vld [vmem:[#allocation5 + $0x238] sm:$0xff]  ;;  %v724_v10 = vld [vmem:[#allocation5 + $0x210] sm:$0xff] }
  0x18   :  { %1583 = vmatpush3.msra.mxu1 %v363_v14  ;;  %v726_v6 = vld [vmem:[#allocation5 + $0x220] sm:$0xff]  ;;  %v725_v8 = vld [vmem:[#allocation5 + $0x218] sm:$0xff]  ;;  %v706_v12 = vld [vmem:[#allocation5 + $0x190] sm:$0xff] }
  0x19   :  { %1584 = vmatprep.subr.mxu1 %v362_v16  ;;  %v705_v14 = vld [vmem:[#allocation5 + $0x188] sm:$0xff] }
  0x1a   :  { %1585 = vmatpush3.msra.mxu1 %v362_v16  ;;  %v704_v16 = vld [vmem:[#allocation5 + $0x180] sm:$0xff] }
  0x1b   :  { %1586 = vmatprep.subr.mxu1 %v361_v18 }
  0x1c   :  { %1587 = vmatpush3.msra.mxu1 %v361_v18  ;;  %v1353_v18 = vld [vmem:[%s1922_s2 + $0x1] ss:$0 sm:$0xff] }
  0x1d   :  { %1588 = vmatprep.subr.mxu1 %v360_v20 }
  0x1e   :  { %1589 = vmatpush3.msra.mxu1 %v360_v20 }
  0x1f   :  { %1624 = vmatprep.subr.mxu1 %v729_v1 }
  0x8a   :  { %v50_v3 = vpop.trf.xlu0 }
  0x8b   :  { %1517 = vmatprep.mubr.msk.f32.mxu0 %vm66_vm1, %v50_v3 }
  0x8e   :  { %v51_v4 = vpop.trf.xlu0 }
  0x8f   :  { %1518 = vmatmul.mubr.msk.f32.vlgmr.msra.gmra.mxu0 %vm66_vm1, %v51_v4 }
  0x90   :  { %1521 = vmatpush3.msk.msra.mxu0 %vm73_vm0, %v29_v2  ;;  %1522 = vmatprep.mubr.msk.f32.mxu0 %vm66_vm1, %v50_v3  ;;  %v728_v2 = vld [vmem:[#allocation5 + $0x230] sm:$0xff] }
  0x91   :  { %1525 = vmatprep.subr.msk.mxu0 %vm73_vm0, %v31_v5 }
  0x93   :  { %1523 = vmatmul.mubr.msk.f32.vlgmr.msra.gmra.mxu0 %vm66_vm1, %v51_v4 }
  0x94   :  { %1526 = vmatpush3.msk.msra.mxu0 %vm73_vm0, %v31_v5  ;;  %1527 = vmatprep.mubr.msk.f32.mxu0 %vm66_vm1, %v50_v3  ;;  %v711_v3 = vld [vmem:[#allocation5 + $0x1b8] sm:$0xff]  ;;  %v710_v5 = vld [vmem:[#allocation5 + $0x1b0] sm:$0xff] }
  0x95   :  { %1530 = vmatprep.subr.mxu0 %v358_v7 }
  0x97   :  { %1528 = vmatmul.mubr.msk.f32.vlgmr.msra.gmra.mxu0 %vm66_vm1, %v51_v4  ;;  %v727_v4 = vld [vmem:[#allocation5 + $0x228] sm:$0xff] }
  0x98   :  { %1531 = vmatpush3.msra.mxu0 %v358_v7  ;;  %v709_v7 = vld [vmem:[#allocation5 + $0x1a8] sm:$0xff] }
  0x99   :  { %1532 = vmatprep.subr.mxu0 %v357_v9 }
  0x9a   :  { %1533 = vmatpush3.msra.mxu0 %v357_v9  ;;  %v708_v9 = vld [vmem:[#allocation5 + $0x1a0] sm:$0xff] }
  0x9b   :  { %1534 = vmatprep.subr.mxu0 %v356_v11 }
  0x9c   :  { %1535 = vmatpush3.msra.mxu0 %v356_v11  ;;  %v707_v11 = vld [vmem:[#allocation5 + $0x198] sm:$0xff] }
  0x9d   :  { %1536 = vmatprep.subr.mxu0 %v355_v13 }
  0x9e   :  { %1537 = vmatpush3.msra.mxu0 %v355_v13  ;;  %v723_v13 = vld [vmem:[#allocation5 + $0x208] sm:$0xff] }
  0x9f   :  { %1538 = vmatprep.subr.mxu0 %v354_v15 }
  0xa0   :  { %1539 = vmatpush3.msra.mxu0 %v354_v15  ;;  %v722_v15 = vld [vmem:[#allocation5 + $0x200] sm:$0xff] }
  0xa1   :  { %1540 = vmatprep.subr.mxu0 %v353_v17 }
  0xa2   :  { %1541 = vmatpush3.msra.mxu0 %v353_v17  ;;  %v1820_v17 = vld [vmem:[#allocation5 + $0x1f8] sm:$0xff] }
  0xa3   :  { %1542 = vmatprep.subr.mxu0 %v352_v19 }
  0xa4   :  { %1543 = vmatpush3.msra.mxu0 %v352_v19 }
  0xa5   :  { %1544 = vmatprep.subr.mxu0 %v351_v21 }
  0xa6   :  { %1545 = vmatpush3.msra.mxu0 %v351_v21 }
  0xa7   :  { %1552 = vmatprep.subr.mxu0 %v376_v22 }
 0x14f   :  { %v1519_v23 = vpop.f32.mrf.mxu0 }
 0x151   :  { %v143_v24 = vpop.f32.mrf.mxu0 }
 0x153   :  { %v1524_v25 = vpop.f32.mrf.mxu0 }
 0x154   :  { %v234_v26 = vrot.slane %v1524_v25, 1 }
 0x155   :  { %v221_v28 = vpop.f32.mrf.mxu0 }
 0x156   :  { %v239_v29 = vadd.f32 %v1519_v23, %v234_v26  ;;  %v233_v30 = vrot.slane %v221_v28, 1 }
 0x157   :  { %v1529_v31 = vpop.f32.mrf.mxu0 }
 0x158   :  { %v335_v32 = vadd.f32 %v1340_v27, %v239_v29  ;;  %v235_v33 = vsel %vm232_vm2, %v233_v30, %v234_v26  ;;  %v322_v34 = vadd.f32 %v1529_v31, %v1340_v27 }
 0x159   :  { %v238_v35 = vadd.f32 %v235_v33, %v143_v24  ;;  %v316_v36 = vpop.f32.mrf.mxu0 }
 0x15a   :  { %vm337_vm3 = vcmp.ge.f32.partialorder %v335_v32, 0.0  ;;  %v339_v37 = vmul.f32 0.2, %v335_v32  ;;  %vm326_vm4 = vcmp.ge.f32.partialorder %v322_v34, 0.0  ;;  %v328_v38 = vmul.f32 0.2, %v322_v34 }
 0x15b   :  { %v334_v39 = vadd.f32 %v1340_v27, %v238_v35  ;;  %v317_v40 = vadd.f32 %v1340_v27, %v316_v36 }
 0x15c   :  { %v341_v41 = vsel %vm337_vm3, %v335_v32, %v339_v37  ;;  %v330_v42 = vsel %vm326_vm4, %v322_v34, %v328_v38 }
 0x15d   :  { %345 = vst [vmem:[#allocation2 + $0x11] ss:$2 sm:$0x7f] %v341_v41  ;;  %vm336_vm5 = vcmp.ge.f32.partialorder %v334_v39, 0.0  ;;  %v338_v43 = vmul.f32 0.2, %v334_v39 }
 0x15e   :  { %333 = vst [vmem:[#allocation2 + $0x10] ss:$2 sm:$0xff] %v330_v42  ;;  %vm325_vm6 = vcmp.ge.f32.partialorder %v317_v40, 0.0  ;;  %v327_v44 = vmul.f32 0.2, %v317_v40 }
 0x15f   :  { %v340_v45 = vsel %vm336_vm5, %v334_v39, %v338_v43 }
 0x160   :  { %v329_v46 = vsel %vm325_vm6, %v317_v40, %v327_v44  ;;  %343 = vst [vmem:[#allocation2 + $0x1] ss:$2 sm:$0xff] %v340_v45 }
 0x161   :  { %331 = vst [vmem:[#allocation2] ss:$2 sm:$0xff] %v329_v46 }
 0x165   :  { %v348_v47 = vld [vmem:[#allocation2 + $0x10] sm:$0xff]  ;;  %v349_v48 = vld [vmem:[#allocation2 + $0x18] sm:$0x7f] }
 0x166   :  { %v386_v53 = vrot.slane %v348_v47, 1  ;;  %v388_v54 = vrot.slane %v349_v48, 1 }
 0x168   :  { %v346_v49 = vld [vmem:[#allocation2] sm:$0xff]  ;;  %v347_v50 = vld [vmem:[#allocation2 + $0x8] sm:$0xff]  ;;  %v389_v58 = vsel %vm232_vm2, %v386_v53, %v388_v54 }
 0x169   :  { %v383_v51 = vrot.slane %v346_v49, 1  ;;  %1590 = vmatprep.mubr.msk.f32.mxu1 %vm390_vm7, %v346_v49  ;;  %v384_v52 = vrot.slane %v347_v50, 1 }
 0x16a   :  { %1591 = vmatmul.mubr.msk.f32.vlgmr.msra.gmra.mxu1 %vm390_vm7, %v347_v50 }
 0x16b   :  { %1593 = vmatprep.mubr.msk.f32.mxu1 %vm390_vm7, %v348_v47  ;;  %v385_v55 = vsel %vm232_vm2, %v383_v51, %v384_v52  ;;  %v387_v56 = vsel %vm232_vm2, %v384_v52, %v386_v53  ;;  %1625 = vmatpush3.msra.mxu1 %v729_v1 }
 0x16c   :  { %1546 = vmatprep.mubr.msk.f32.mxu0 %vm390_vm7, %v385_v55  ;;  %1626 = vmatprep.subr.mxu1 %v728_v2 }
 0x16d   :  { %1547 = vmatmul.mubr.msk.f32.vlgmr.msra.gmra.mxu0 %vm390_vm7, %v387_v56  ;;  %1627 = vmatpush3.msra.mxu1 %v728_v2 }
 0x16e   :  { %1553 = vmatpush3.msra.mxu0 %v376_v22  ;;  %1549 = vmatprep.mubr.msk.f32.mxu0 %vm390_vm7, %v389_v58 }
 0x16f   :  { %1554 = vmatprep.subr.mxu0 %v375_v57  ;;  %1594 = vmatmul.mubr.msk.f32.gmra.mxu1 %vm390_vm7, %v349_v48 }
 0x170   :  { %1555 = vmatpush3.msra.mxu0 %v375_v57  ;;  %1628 = vmatprep.subr.mxu1 %v727_v4 }
 0x171   :  { %1556 = vmatprep.subr.mxu0 %v374_v59  ;;  %1550 = vmatmul.mubr.msk.f32.gmra.mxu0 %vm390_vm7, %v388_v54 }
 0x172   :  { %1557 = vmatpush3.msra.mxu0 %v374_v59  ;;  %1568 = vmatprep.mubr.msk.f32.mxu0 %vm390_vm7, %v346_v49 }
 0x173   :  { %1558 = vmatprep.subr.mxu0 %v373_v60  ;;  %1629 = vmatpush3.msra.mxu1 %v727_v4 }
 0x174   :  { %1559 = vmatpush3.msra.mxu0 %v373_v60  ;;  %1630 = vmatprep.subr.mxu1 %v726_v6 }
 0x175   :  { %1560 = vmatprep.subr.mxu0 %v372_v61  ;;  %1631 = vmatpush3.msra.mxu1 %v726_v6 }
 0x176   :  { %1561 = vmatpush3.msra.mxu0 %v372_v61  ;;  %1632 = vmatprep.subr.mxu1 %v725_v8  ;;  %v719_v61 = vld [vmem:[#allocation5 + $0x1f0] sm:$0xff] }
 0x177   :  { %1562 = vmatprep.subr.mxu0 %v371_v62  ;;  %1633 = vmatpush3.msra.mxu1 %v725_v8 }
 0x178   :  { %1563 = vmatpush3.msra.mxu0 %v371_v62  ;;  %1634 = vmatprep.subr.mxu1 %v724_v10 }
 0x179   :  { %1564 = vmatprep.subr.mxu0 %v370_v63  ;;  %1635 = vmatpush3.msra.mxu1 %v724_v10 }
 0x17a   :  { %1565 = vmatpush3.msra.mxu0 %v370_v63  ;;  %1636 = vmatprep.subr.mxu1 %v723_v13 }
 0x17b   :  { %1566 = vmatprep.subr.mxu0 %v369_v0  ;;  %1637 = vmatpush3.msra.mxu1 %v723_v13  ;;  %v715_v13 = vld [vmem:[#allocation5 + $0x1d0] sm:$0xff] }
 0x17c   :  { %1567 = vmatpush3.msra.mxu0 %v369_v0  ;;  %1638 = vmatprep.subr.mxu1 %v722_v15 }
 0x17d   :  { %1569 = vmatmul.mubr.msk.f32.vlgmr.msra.gmra.mxu0 %vm390_vm7, %v347_v50  ;;  %1596 = vmatprep.subr.mxu0 %v711_v3 }
 0x17e   :  { %1571 = vmatprep.mubr.msk.f32.mxu0 %vm390_vm7, %v348_v47  ;;  %1597 = vmatpush3.msra.mxu0 %v711_v3  ;;  %v718_v3 = vld [vmem:[#allocation5 + $0x1e8] sm:$0xff] }
 0x17f   :  { %1598 = vmatprep.subr.mxu0 %v710_v5  ;;  %1639 = vmatpush3.msra.mxu1 %v722_v15  ;;  %v714_v15 = vld [vmem:[#allocation5 + $0x1c8] sm:$0xff] }
 0x180   :  { %1599 = vmatpush3.msra.mxu0 %v710_v5 }
 0x181   :  { %1572 = vmatmul.mubr.msk.f32.gmra.mxu0 %vm390_vm7, %v349_v48  ;;  %1600 = vmatprep.subr.mxu0 %v709_v7 }
 0x182   :  { %1601 = vmatpush3.msra.mxu0 %v709_v7  ;;  %v717_v7 = vld [vmem:[#allocation5 + $0x1e0] sm:$0xff] }
 0x183   :  { %1602 = vmatprep.subr.mxu0 %v708_v9 }
 0x184   :  { %1603 = vmatpush3.msra.mxu0 %v708_v9 }
 0x185   :  { %1604 = vmatprep.subr.mxu0 %v707_v11 }
 0x186   :  { %1605 = vmatpush3.msra.mxu0 %v707_v11  ;;  %v716_v11 = vld [vmem:[#allocation5 + $0x1d8] sm:$0xff] }
 0x187   :  { %1606 = vmatprep.subr.mxu0 %v706_v12 }
 0x188   :  { %1607 = vmatpush3.msra.mxu0 %v706_v12 }
 0x189   :  { %1608 = vmatprep.subr.mxu0 %v705_v14 }
 0x18a   :  { %1609 = vmatpush3.msra.mxu0 %v705_v14 }
 0x18b   :  { %1610 = vmatprep.subr.mxu0 %v704_v16 }
 0x18c   :  { %1611 = vmatpush3.msra.mxu0 %v704_v16  ;;  %v713_v16 = vld [vmem:[#allocation5 + $0x1c0] sm:$0xff] }
 0x18d   :  { %1652 = vmatprep.subr.mxu0 %v1820_v17 }
 0x22a   :  { %v1592_v19 = vpop.f32.mrf.mxu1 }
 0x22b   :  { %v655_v20 = vadd.f32 %v1592_v19, %v1353_v18 }
 0x22c   :  { %v649_v21 = vpop.f32.mrf.mxu1 }
 0x22d   :  { %1719 = vtanh.f32 %v655_v20  ;;  %v650_v22 = vadd.f32 %v1353_v18, %v649_v21  ;;  %v1548_v23 = vpop.f32.mrf.mxu0  ;;  %v1768_v21 = vmov 0.0  }
 0x22f   :  { %1721 = vtanh.f32 %v650_v22  ;;  %v1595_v24 = vpop.f32.mrf.mxu1  ;;  %v465_v28 = vpop.f32.mrf.mxu0 }
 0x230   :  { %v665_v25 = vadd.f32 %v1595_v24, %v1353_v18 }
 0x231   :  { %v659_v26 = vpop.f32.mrf.mxu1  ;;  %v1551_v29 = vpop.f32.mrf.mxu0 }
 0x232   :  { %1723 = vtanh.f32 %v665_v25  ;;  %v660_v27 = vadd.f32 %v1353_v18, %v659_v26 }
 0x233   :  { %v475_v31 = vpop.f32.mrf.mxu0 }
 0x234   :  { %1725 = vtanh.f32 %v660_v27  ;;  %v1375_v27 = vld [vmem:[%s1922_s2 + $0x2] ss:$0 sm:$0xff] }
 0x23a   :  { %v1720_v30 = vpop.eup %1719 }
 0x23b   :  { %674 = vst [vmem:[#allocation3 + $0x10] ss:$2 sm:$0xff] %v1720_v30 }
 0x23c   :  { %v1722_v32 = vpop.eup %1721 }
 0x23d   :  { %672 = vst [vmem:[#allocation3] ss:$2 sm:$0xff] %v1722_v32  ;;  %v1570_v33 = vpop.f32.mrf.mxu0 }
 0x23e   :  { %v564_v34 = vadd.f32 %v1570_v33, %v1548_v23 }
 0x23f   :  { %v1724_v35 = vpop.eup %1723  ;;  %v558_v36 = vpop.f32.mrf.mxu0 }
 0x240   :  { %678 = vst [vmem:[#allocation3 + $0x30] ss:$2 sm:$0x7f] %v1724_v35  ;;  %v680_v37 = vadd.f32 %v1353_v18, %v564_v34  ;;  %v559_v38 = vadd.f32 %v558_v36, %v465_v28 }
 0x241   :  { %v1726_v39 = vpop.eup %1725  ;;  %v1573_v40 = vpop.f32.mrf.mxu0 }
 0x242   :  { %676 = vst [vmem:[#allocation3 + $0x20] ss:$2 sm:$0xff] %v1726_v39  ;;  %1727 = vtanh.f32 %v680_v37  ;;  %v679_v41 = vadd.f32 %v1353_v18, %v559_v38  ;;  %v574_v42 = vadd.f32 %v1573_v40, %v1551_v29 }
 0x243   :  { %v568_v43 = vpop.f32.mrf.mxu0 }
 0x244   :  { %1729 = vtanh.f32 %v679_v41  ;;  %v682_v44 = vadd.f32 %v1353_v18, %v574_v42  ;;  %v569_v45 = vadd.f32 %v568_v43, %v475_v31 }
 0x246   :  { %1731 = vtanh.f32 %v682_v44  ;;  %v681_v46 = vadd.f32 %v1353_v18, %v569_v45 }
 0x248   :  { %1733 = vtanh.f32 %v681_v46 }
 0x24f   :  { %v1728_v47 = vpop.eup %1727 }
 0x250   :  { %690 = vst [vmem:[#allocation3 + $0x11] ss:$2 sm:$0xff] %v1728_v47 }
 0x251   :  { %v1730_v48 = vpop.eup %1729 }
 0x252   :  { %688 = vst [vmem:[#allocation3 + $0x1] ss:$2 sm:$0xff] %v1730_v48 }
 0x253   :  { %v1732_v49 = vpop.eup %1731 }
 0x254   :  { %694 = vst [vmem:[#allocation3 + $0x31] ss:$2 sm:$0x3f] %v1732_v49 }
 0x255   :  { %v1734_v50 = vpop.eup %1733 }
 0x256   :  { %692 = vst [vmem:[#allocation3 + $0x21] ss:$2 sm:$0xff] %v1734_v50 }
 0x257   :  { %v1826_v51 = vld [vmem:[#allocation3 + $0x10] sm:$0xff]  ;;  %v1828_v52 = vld [vmem:[#allocation3 + $0x18] sm:$0xff] }
 0x258   :  { %v743_v56 = vrot.slane %v1826_v51, 1  ;;  %v745_v58 = vrot.slane %v1828_v52, 1 }
 0x259   :  { %v695_v53 = vld [vmem:[#allocation3] sm:$0xff]  ;;  %v696_v54 = vld [vmem:[#allocation3 + $0x8] sm:$0xff] }
 0x25a   :  { %v740_v55 = vrot.slane %v695_v53, 1  ;;  %1640 = vmatprep.mubr.msk.f32.mxu1 %vm390_vm7, %v695_v53  ;;  %v741_v57 = vrot.slane %v696_v54, 1  ;;  %v746_v0 = vsel %vm232_vm2, %v743_v56, %v745_v58 }
 0x25b   :  { %1641 = vmatmul.mubr.msk.f32.vlgmr.msra.gmra.mxu1 %vm390_vm7, %v696_v54  ;;  %v701_v4 = vld [vmem:[#allocation3 + $0x30] sm:$0xff]  ;;  %v702_v5 = vld [vmem:[#allocation3 + $0x38] sm:$0x1f] }
 0x25c   :  { %1643 = vmatprep.mubr.msk.f32.mxu1 %vm390_vm7, %v1826_v51  ;;  %v742_v59 = vsel %vm232_vm2, %v740_v55, %v741_v57  ;;  %v744_v60 = vsel %vm232_vm2, %v741_v57, %v743_v56  ;;  %v751_v9 = vrot.slane %v701_v4, 1  ;;  %v753_v10 = vrot.slane %v702_v5, 1 }
 0x25d   :  { %1612 = vmatprep.mubr.msk.f32.mxu0 %vm390_vm7, %v742_v59  ;;  %v699_v62 = vld [vmem:[#allocation3 + $0x20] sm:$0xff]  ;;  %v700_v63 = vld [vmem:[#allocation3 + $0x28] sm:$0xff] }
 0x25e   :  { %1613 = vmatmul.mubr.msk.f32.vlgmr.msra.gmra.mxu0 %vm390_vm7, %v744_v60  ;;  %v747_v1 = vrot.slane %v699_v62, 1  ;;  %v749_v2 = vrot.slane %v700_v63, 1  ;;  %v754_v14 = vsel %vm232_vm2, %v751_v9, %v753_v10 }
 0x25f   :  { %1653 = vmatpush3.msra.mxu0 %v1820_v17  ;;  %1615 = vmatprep.mubr.msk.f32.mxu0 %vm390_vm7, %v746_v0  ;;  %v1147_v17 = vlaneseq }
 0x260   :  { %1644 = vmatmul.mubr.msk.f32.gmra.mxu1 %vm390_vm7, %v1828_v52  ;;  %1654 = vmatprep.subr.mxu0 %v719_v61  ;;  %v748_v6 = vsel %vm232_vm2, %v745_v58, %v747_v1  ;;  %v750_v8 = vsel %vm232_vm2, %v747_v1, %v749_v2  ;;  %v752_v12 = vsel %vm232_vm2, %v749_v2, %v751_v9 }
 0x261   :  { %1646 = vmatprep.mubr.msk.f32.mxu1 %vm390_vm7, %v699_v62  ;;  %1655 = vmatpush3.msra.mxu0 %v719_v61  ;;  %v1148_v18 = vshrl.u32 %v1147_v17, 7  ;;  %v1151_v19 = vand.u32 127, %v1147_v17 }
 0x262   :  { %1656 = vmatprep.subr.mxu0 %v718_v3  ;;  %1616 = vmatmul.mubr.msk.f32.gmra.mxu0 %vm390_vm7, %v748_v6 }
 0x263   :  { %1657 = vmatpush3.msra.mxu0 %v718_v3  ;;  %1618 = vmatprep.mubr.msk.f32.mxu0 %vm390_vm7, %v750_v8  ;;  %v1149_v20 = vadd.s32 8, %v1148_v18  ;;  %vm1152_vm8 = vcmp.eq.s32.totalorder %v1148_v18, %v1151_v19 }
 0x264   :  { %1647 = vmatmul.mubr.msk.f32.gmra.mxu1 %vm390_vm7, %v700_v63  ;;  %1658 = vmatprep.subr.mxu0 %v717_v7  ;;  %v1384_v22 = vsel %vm1152_vm8, 1.0, %v1768_v21 }
 0x265   :  { %1649 = vmatprep.mubr.msk.f32.mxu1 %vm390_vm7, %v701_v4  ;;  %1659 = vmatpush3.msra.mxu0 %v717_v7  ;;  %vm1153_vm9 = vcmp.eq.s32.totalorder %v1149_v20, %v1151_v19 }
 0x266   :  { %1660 = vmatprep.subr.mxu0 %v716_v11  ;;  %1619 = vmatmul.mubr.msk.f32.gmra.mxu0 %vm390_vm7, %v752_v12  ;;  %v1868_v23 = vsel %vm1153_vm9, 1.0, %v1768_v21 }
 0x267   :  { %1661 = vmatpush3.msra.mxu0 %v716_v11  ;;  %1621 = vmatprep.mubr.msk.f32.mxu0 %vm390_vm7, %v754_v14 }
 0x268   :  { %1650 = vmatmul.mubr.msk.f32.gmra.mxu1 %vm390_vm7, %v702_v5  ;;  %1662 = vmatprep.subr.mxu0 %v715_v13 }
 0x269   :  { %1663 = vmatpush3.msra.mxu0 %v715_v13  ;;  %1712 = vmatprep.mubr.msk.f32.mxu1 %vm390_vm7, %v1384_v22 }
 0x26a   :  { %1664 = vmatprep.subr.mxu0 %v714_v15  ;;  %1622 = vmatmul.mubr.msk.f32.gmra.mxu0 %vm390_vm7, %v753_v10 }
 0x26b   :  { %1665 = vmatpush3.msra.mxu0 %v714_v15  ;;  %1668 = vmatprep.mubr.msk.f32.mxu0 %vm390_vm7, %v695_v53 }
 0x26c   :  { %1666 = vmatprep.subr.mxu0 %v713_v16 }
 0x26d   :  { %1667 = vmatpush3.msra.mxu0 %v713_v16 }
 0x26e   :  { %1669 = vmatmul.mubr.msk.f32.vlgmr.msra.gmra.mxu0 %vm390_vm7, %v696_v54 }
 0x26f   :  { %1671 = vmatprep.mubr.msk.f32.mxu0 %vm390_vm7, %v1826_v51 }
 0x272   :  { %1672 = vmatmul.mubr.msk.f32.gmra.mxu0 %vm390_vm7, %v1828_v52 }
 0x273   :  { %1674 = vmatprep.mubr.msk.f32.mxu0 %vm390_vm7, %v699_v62 }
 0x276   :  { %1675 = vmatmul.mubr.msk.f32.gmra.mxu0 %vm390_vm7, %v700_v63 }
 0x277   :  { %1677 = vmatprep.mubr.msk.f32.mxu0 %vm390_vm7, %v701_v4 }
 0x27a   :  { %1678 = vmatmul.mubr.msk.f32.gmra.mxu0 %vm390_vm7, %v702_v5 }
 0x31b   :  { %v1642_v24 = vpop.f32.mrf.mxu1 }
 0x31d   :  { %v958_v25 = vpop.f32.mrf.mxu1 }
 0x31e   :  { %v1614_v26 = vpop.f32.mrf.mxu0 }
 0x31f   :  { %v964_v28 = vadd.f32 %v1642_v24, %v1614_v26 }
 0x320   :  { %v1645_v29 = vpop.f32.mrf.mxu1  ;;  %v837_v30 = vpop.f32.mrf.mxu0 }
 0x321   :  { %v1124_v31 = vadd.f32 %v1375_v27, %v964_v28  ;;  %v959_v32 = vadd.f32 %v958_v25, %v837_v30 }
 0x322   :  { %v968_v33 = vpop.f32.mrf.mxu1  ;;  %v1617_v34 = vpop.f32.mrf.mxu0 }
 0x323   :  { %1134 = vst [vmem:[#allocation4 + $0x11] ss:$2 sm:$0xff] %v1124_v31  ;;  %v1123_v35 = vadd.f32 %v1375_v27, %v959_v32  ;;  %v974_v36 = vadd.f32 %v1645_v29, %v1617_v34 }
 0x324   :  { %v1648_v37 = vpop.f32.mrf.mxu1  ;;  %v847_v38 = vpop.f32.mrf.mxu0 }
 0x325   :  { %1132 = vst [vmem:[#allocation4 + $0x1] ss:$2 sm:$0xff] %v1123_v35  ;;  %v1126_v39 = vadd.f32 %v1375_v27, %v974_v36  ;;  %v969_v40 = vadd.f32 %v968_v33, %v847_v38 }
 0x326   :  { %v978_v41 = vpop.f32.mrf.mxu1  ;;  %v1620_v42 = vpop.f32.mrf.mxu0 }
 0x327   :  { %1138 = vst [vmem:[#allocation4 + $0x31] ss:$2 sm:$0xff] %v1126_v39  ;;  %v1125_v43 = vadd.f32 %v1375_v27, %v969_v40  ;;  %v984_v44 = vadd.f32 %v1648_v37, %v1620_v42 }
 0x328   :  { %v1651_v45 = vpop.f32.mrf.mxu1  ;;  %v857_v46 = vpop.f32.mrf.mxu0 }
 0x329   :  { %1136 = vst [vmem:[#allocation4 + $0x21] ss:$2 sm:$0xff] %v1125_v43  ;;  %v1128_v47 = vadd.f32 %v1375_v27, %v984_v44  ;;  %v979_v48 = vadd.f32 %v978_v41, %v857_v46 }
 0x32a   :  { %v1623_v49 = vpop.f32.mrf.mxu0  ;;  %v988_v52 = vpop.f32.mrf.mxu1 }
 0x32b   :  { %1142 = vst [vmem:[#allocation4 + $0x51] ss:$2 sm:$0xff] %v1128_v47  ;;  %v1127_v50 = vadd.f32 %v1375_v27, %v979_v48  ;;  %v994_v51 = vadd.f32 %v1651_v45, %v1623_v49 }
 0x32c   :  { %v867_v53 = vpop.f32.mrf.mxu0 }
 0x32d   :  { %1140 = vst [vmem:[#allocation4 + $0x41] ss:$2 sm:$0xff] %v1127_v50  ;;  %v1130_v54 = vadd.f32 %v1375_v27, %v994_v51  ;;  %v989_v55 = vadd.f32 %v988_v52, %v867_v53 }
 0x32e   :  { %v1670_v56 = vpop.f32.mrf.mxu0 }
 0x32f   :  { %1146 = vst [vmem:[#allocation4 + $0x71] ss:$2 sm:$0xf] %v1130_v54  ;;  %v1129_v57 = vadd.f32 %v1375_v27, %v989_v55  ;;  %v1075_v58 = vadd.f32 %v1670_v56, %v1375_v27 }
 0x330   :  { %v1069_v59 = vpop.f32.mrf.mxu0 }
 0x331   :  { %1144 = vst [vmem:[#allocation4 + $0x61] ss:$2 sm:$0xff] %v1129_v57  ;;  %1110 = vst [vmem:[#allocation4 + $0x10] ss:$2 sm:$0xff] %v1075_v58  ;;  %v1070_v60 = vadd.f32 %v1375_v27, %v1069_v59 }
 0x332   :  { %v1673_v61 = vpop.f32.mrf.mxu0 }
 0x333   :  { %1108 = vst [vmem:[#allocation4] ss:$2 sm:$0xff] %v1070_v60  ;;  %v1085_v62 = vadd.f32 %v1673_v61, %v1375_v27 }
 0x334   :  { %v1079_v63 = vpop.f32.mrf.mxu0 }
 0x335   :  { %1114 = vst [vmem:[#allocation4 + $0x30] ss:$2 sm:$0xff] %v1085_v62  ;;  %v1080_v0 = vadd.f32 %v1375_v27, %v1079_v63 }
 0x336   :  { %v1676_v1 = vpop.f32.mrf.mxu0 }
 0x337   :  { %1112 = vst [vmem:[#allocation4 + $0x20] ss:$2 sm:$0xff] %v1080_v0  ;;  %v1095_v2 = vadd.f32 %v1676_v1, %v1375_v27 }
 0x338   :  { %v1089_v3 = vpop.f32.mrf.mxu0  ;;  %v1161_v21 = vld [vmem:[#allocation4 + $0x18] sm:$0xff]  ;;  %v1160_v22 = vld [vmem:[#allocation4 + $0x10] sm:$0xff] }
 0x339   :  { %1118 = vst [vmem:[#allocation4 + $0x50] ss:$2 sm:$0xff] %v1095_v2  ;;  %v1090_v4 = vadd.f32 %v1375_v27, %v1089_v3 }
 0x33a   :  { %v1679_v5 = vpop.f32.mrf.mxu0  ;;  %v1159_v24 = vld [vmem:[#allocation4 + $0x8] sm:$0xff]  ;;  %v1158_v25 = vld [vmem:[#allocation4] sm:$0xff] }
 0x33b   :  { %1116 = vst [vmem:[#allocation4 + $0x40] ss:$2 sm:$0xff] %v1090_v4  ;;  %v1105_v6 = vadd.f32 %v1679_v5, %v1375_v27 }
 0x33c   :  { %v1099_v7 = vpop.f32.mrf.mxu0  ;;  %v1165_v17 = vld [vmem:[#allocation4 + $0x38] sm:$0xff]  ;;  %v1164_v18 = vld [vmem:[#allocation4 + $0x30] sm:$0xff] }
 0x33d   :  { %1122 = vst [vmem:[#allocation4 + $0x70] ss:$2 sm:$0x1f] %v1105_v6  ;;  %v1100_v8 = vadd.f32 %v1375_v27, %v1099_v7 }
 0x33e   :  { %v1163_v19 = vld [vmem:[#allocation4 + $0x28] sm:$0xff]  ;;  %v1162_v20 = vld [vmem:[#allocation4 + $0x20] sm:$0xff] }
 0x33f   :  { %1120 = vst [vmem:[#allocation4 + $0x60] ss:$2 sm:$0xff] %v1100_v8 }
 0x340   :  { %v1169_v13 = vld [vmem:[#allocation4 + $0x58] sm:$0xff]  ;;  %v1168_v14 = vld [vmem:[#allocation4 + $0x50] sm:$0xff] }
 0x342   :  { %v1167_v15 = vld [vmem:[#allocation4 + $0x48] sm:$0xff]  ;;  %v1166_v16 = vld [vmem:[#allocation4 + $0x40] sm:$0xff] }
 0x344   :  { %v1173_v9 = vld [vmem:[#allocation4 + $0x78] sm:$0x1]  ;;  %v1172_v10 = vld [vmem:[#allocation4 + $0x70] sm:$0xff] }
 0x345   :  { %1680 = vmatprep.subr.msk.mxu1 %vm390_vm7, %v1173_v9 }
 0x346   :  { %1681 = vmatpush3.xpose.msk.msra.mxu1 %vm390_vm7, %v1173_v9  ;;  %v1171_v11 = vld [vmem:[#allocation4 + $0x68] sm:$0xff]  ;;  %v1170_v12 = vld [vmem:[#allocation4 + $0x60] sm:$0xff] }
 0x347   :  { %1682 = vmatprep.subr.msk.mxu1 %vm390_vm7, %v1172_v10 }
 0x34a   :  { %1683 = vmatpush3.xpose.msk.msra.mxu1 %vm390_vm7, %v1172_v10 }
 0x34b   :  { %1684 = vmatprep.subr.msk.mxu1 %vm390_vm7, %v1171_v11 }
 0x34e   :  { %1685 = vmatpush3.xpose.msk.msra.mxu1 %vm390_vm7, %v1171_v11 }
 0x34f   :  { %1686 = vmatprep.subr.msk.mxu1 %vm390_vm7, %v1170_v12 }
 0x352   :  { %1687 = vmatpush3.xpose.msk.msra.mxu1 %vm390_vm7, %v1170_v12 }
 0x353   :  { %1688 = vmatprep.subr.msk.mxu1 %vm390_vm7, %v1169_v13 }
 0x356   :  { %1689 = vmatpush3.xpose.msk.msra.mxu1 %vm390_vm7, %v1169_v13 }
 0x357   :  { %1690 = vmatprep.subr.msk.mxu1 %vm390_vm7, %v1168_v14 }
 0x35a   :  { %1691 = vmatpush3.xpose.msk.msra.mxu1 %vm390_vm7, %v1168_v14 }
 0x35b   :  { %1692 = vmatprep.subr.msk.mxu1 %vm390_vm7, %v1167_v15 }
 0x35e   :  { %1693 = vmatpush3.xpose.msk.msra.mxu1 %vm390_vm7, %v1167_v15 }
 0x35f   :  { %1694 = vmatprep.subr.msk.mxu1 %vm390_vm7, %v1166_v16 }
 0x362   :  { %1695 = vmatpush3.xpose.msk.msra.mxu1 %vm390_vm7, %v1166_v16 }
 0x363   :  { %1696 = vmatprep.subr.msk.mxu1 %vm390_vm7, %v1165_v17 }
 0x366   :  { %1697 = vmatpush3.xpose.msk.msra.mxu1 %vm390_vm7, %v1165_v17 }
 0x367   :  { %1698 = vmatprep.subr.msk.mxu1 %vm390_vm7, %v1164_v18 }
 0x36a   :  { %1699 = vmatpush3.xpose.msk.msra.mxu1 %vm390_vm7, %v1164_v18 }
 0x36b   :  { %1700 = vmatprep.subr.msk.mxu1 %vm390_vm7, %v1163_v19 }
 0x36e   :  { %1701 = vmatpush3.xpose.msk.msra.mxu1 %vm390_vm7, %v1163_v19 }
 0x36f   :  { %1702 = vmatprep.subr.msk.mxu1 %vm390_vm7, %v1162_v20 }
 0x372   :  { %1703 = vmatpush3.xpose.msk.msra.mxu1 %vm390_vm7, %v1162_v20 }
 0x373   :  { %1704 = vmatprep.subr.msk.mxu1 %vm390_vm7, %v1161_v21 }
 0x376   :  { %1705 = vmatpush3.xpose.msk.msra.mxu1 %vm390_vm7, %v1161_v21 }
 0x377   :  { %1706 = vmatprep.subr.msk.mxu1 %vm390_vm7, %v1160_v22 }
 0x37a   :  { %1707 = vmatpush3.xpose.msk.msra.mxu1 %vm390_vm7, %v1160_v22 }
 0x37b   :  { %1708 = vmatprep.subr.msk.mxu1 %vm390_vm7, %v1159_v24 }
 0x37e   :  { %1709 = vmatpush3.xpose.msk.msra.mxu1 %vm390_vm7, %v1159_v24 }
 0x37f   :  { %1710 = vmatprep.subr.msk.mxu1 %vm390_vm7, %v1158_v25 }
 0x382   :  { %1711 = vmatpush3.xpose.msk.msra.mxu1 %vm390_vm7, %v1158_v25 }
 0x385   :  { %1713 = vmatmul.mubr.msk.f32.vlgmr.msra.gmra.mxu1 %vm390_vm7, %v1868_v23 }
 0x445   :  { %v1714_v26 = vpop.f32.mrf.mxu1 }
 0x446   :  { %v1308_v27 = vsel %vm1307_vm10, %v1714_v26, -inf }
 0x447   :  { %1309 = vmax.xlane.f32.xlu1 %v1308_v27  ;;  %v1294_v28 = vpop.f32.mrf.mxu1 }
 0x448   :  { %v1304_v29 = vsel %vm1303_vm11, %v1294_v28, -inf }
 0x449   :  { %1305 = vmax.xlane.f32.xlu0 %v1304_v29 }
 0x4d0   :  { %v1310_v30 = vpop.xlane.xlu1 %1309 }
 0x4d1   :  { %v1312_v31 = vsub.f32 %v1714_v26, %v1310_v30 }
 0x4d2   :  { %v1306_v32 = vpop.xlane.xlu0 %1305 }
 0x4d3   :  { %v1311_v33 = vsub.f32 %v1294_v28, %v1306_v32  ;;  %v1315_v34 = vmul.f32 1.442695, %v1312_v31 }
 0x4d5   :  { %v1313_v35 = vmul.f32 1.442695, %v1311_v33 }
 0x4d7   :  { %1735 = vpow2.f32 %v1313_v35 }
 0x4d8   :  { %1737 = vpow2.f32 %v1315_v34 }
 0x4e4   :  { %v1736_v36 = vpop.eup %1735 }
 0x4e5   :  { %v1317_v23 = vsel %vm1303_vm11, %v1736_v36, 0.0  ;;  %v1738_v37 = vpop.eup %1737 }
 0x4e6   :  { %1318 = vadd.xlane.f32.xlu1 %v1317_v23  ;;  %v1320_v38 = vsel %vm1307_vm10, %v1738_v37, 0.0 }
 0x4ea   :  { %1321 = vadd.xlane.f32.xlu1 %v1320_v38 }
 0x56f   :  { %v1319_v39 = vpop.xlane.xlu1 %1318 }
 0x570   :  { %1739 = vrcp.f32 %v1319_v39 }
 0x573   :  { %v1322_v40 = vpop.xlane.xlu1 %1321 }
 0x574   :  { %1741 = vrcp.f32 %v1322_v40 }
 0x57d   :  { %v1740_v41 = vpop.eup %1739 }
 0x57e   :  { %v1325_v42 = vmul.f32 %v1740_v41, %v1736_v36 }
 0x580   :  { %1327 = vst.msk [vmem:[%s1923_s3] sm:$0xff] %vm1303_vm11, %v1325_v42 }
 0x581   :  { %v1742_v43 = vpop.eup %1741 }
 0x582   :  { %v1326_v44 = vmul.f32 %v1742_v43, %v1738_v37 }
 0x584   :  { %1328 = vst.msk [vmem:[%s1923_s3 + $0x8] sm:$0x1] %vm1307_vm10, %v1326_v44 }
 0x585   :  { %1333 = vsyncpa [#allocation6], 1 }

</bundles_post_ra>
